<compile_context>
chip_gen: v5e
topology: v5e:2x2
jax: 0.10.0
libtpu: 0.0.40
codegen_flags: <defaults>
</compile_context>

<pallas_src>
import functools

import jax
import jax.numpy as jnp
from jax import lax
from jax.experimental import pallas as pl
from jax.experimental.pallas import tpu as pltpu

_NEG = -1e30                 # finite "-inf": keeps the online softmax NaN-free
_MXU_DTYPE = jnp.bfloat16    # native MXU path on v5e/v6e/v7x


def _round_up(x, m):
    return -(-x // m) * m


def _pick_tile(dim, cap, align):
    """Largest tile <= cap dividing dim, preferring align-multiples."""
    if dim <= cap:
        return dim
    t = (cap // align) * align
    while t >= align:
        if dim % t == 0:
            return t
        t -= align
    for t in range(min(cap, dim), 0, -1):
        if dim % t == 0:
            return t
    return dim


def _mosaic_params(semantics, est_bytes):
    # Never below the common 32 MiB scoped default, never above v7x headroom.
    limit = min(56 * (1 << 20), max(32 * (1 << 20), 2 * int(est_bytes)))
    return pltpu.CompilerParams(dimension_semantics=semantics,
                                vmem_limit_bytes=limit)


# ----------------------------------------------------------------------------
# Kernel 1: fused QKV projection -> three (M, E) outputs, head-major columns
# ----------------------------------------------------------------------------
def _qkv_proj_kernel(x_ref, w_ref, q_ref, k_ref, v_ref, acc_ref, *, mxu_dtype):
    @pl.when(pl.program_id(2) == 0)
    def _init():
        acc_ref[...] = jnp.zeros_like(acc_ref)

    x = x_ref[...].astype(mxu_dtype)                      # (tm, tk) bf16
    for p in range(3):                                    # p: 0=q, 1=k, 2=v
        w = w_ref[p].astype(mxu_dtype)                    # (tn, tk) bf16
        acc_ref[p] += lax.dot_general(                    # x @ w.T, f32 acc
            x, w, dimension_numbers=(((1,), (1,)), ((), ())),
            preferred_element_type=jnp.float32)

    @pl.when(pl.program_id(2) == pl.num_programs(2) - 1)
    def _done():
        q_ref[...] = acc_ref[0].astype(q_ref.dtype)
        k_ref[...] = acc_ref[1].astype(k_ref.dtype)
        v_ref[...] = acc_ref[2].astype(v_ref.dtype)


def qkv_projection(x2d, w3, *, out_dtype, mxu_dtype=_MXU_DTYPE,
                   tm_cap=512, tn_cap=512, tk_cap=1024, budget=24 << 20):
    """x2d: (M, In); w3: (3, E, In) stacked [Wq|Wk|Wv], head-major rows."""
    M, In = x2d.shape
    _, E, In2 = w3.shape
    assert In == In2
    x_isz = x2d.dtype.itemsize
    w_isz = w3.dtype.itemsize
    o_isz = jnp.dtype(out_dtype).itemsize

    caps = (tm_cap, tn_cap, tk_cap)
    while True:
        tm = _pick_tile(M, caps[0], 8)
        tn = _pick_tile(E, caps[1], 128)
        tk = _pick_tile(In, caps[2], 128)
        est = (2 * tm * tk * x_isz + 2 * 3 * tn * tk * w_isz
               + 2 * 3 * tm * tn * o_isz + 3 * tm * tn * 4)
        if est <= budget or max(caps) <= 128:
            break
        caps = tuple(max(c // 2, 128) for c in caps)

    grid = (M // tm, E // tn, In // tk)
    out_sds = jax.ShapeDtypeStruct((M, E), out_dtype)
    kernel = functools.partial(_qkv_proj_kernel, mxu_dtype=mxu_dtype)
    return pl.pallas_call(
        kernel,
        out_shape=(out_sds, out_sds, out_sds),
        grid=grid,
        in_specs=[
            pl.BlockSpec((tm, tk), lambda i, j, k: (i, k)),
            pl.BlockSpec((3, tn, tk), lambda i, j, k: (0, j, k)),
        ],
        out_specs=(
            pl.BlockSpec((tm, tn), lambda i, j, k: (i, j)),
            pl.BlockSpec((tm, tn), lambda i, j, k: (i, j)),
            pl.BlockSpec((tm, tn), lambda i, j, k: (i, j)),
        ),
        scratch_shapes=[pltpu.VMEM((3, tm, tn), jnp.float32)],
        compiler_params=_mosaic_params(("parallel", "parallel", "arbitrary"), est),
    )(x2d, w3)


# ----------------------------------------------------------------------------
# Kernel 2: tiled bias-free linear  y = x @ W.T   (W in PyTorch (Out, In) layout)
# ----------------------------------------------------------------------------
def _linear_kernel(x_ref, w_ref, o_ref, acc_ref, *, mxu_dtype):
    @pl.when(pl.program_id(2) == 0)
    def _init():
        acc_ref[...] = jnp.zeros_like(acc_ref)

    acc_ref[...] += lax.dot_general(
        x_ref[...].astype(mxu_dtype), w_ref[...].astype(mxu_dtype),
        dimension_numbers=(((1,), (1,)), ((), ())),
        preferred_element_type=jnp.float32)

    @pl.when(pl.program_id(2) == pl.num_programs(2) - 1)
    def _done():
        o_ref[...] = acc_ref[...].astype(o_ref.dtype)


def linear_no_bias(x2d, w, *, out_dtype=None, mxu_dtype=_MXU_DTYPE,
                   tm_cap=512, tn_cap=512, tk_cap=1024, budget=24 << 20):
    M, In = x2d.shape
    Out, In2 = w.shape
    assert In == In2
    out_dtype = x2d.dtype if out_dtype is None else out_dtype
    x_isz = x2d.dtype.itemsize
    w_isz = w.dtype.itemsize
    o_isz = jnp.dtype(out_dtype).itemsize

    caps = (tm_cap, tn_cap, tk_cap)
    while True:
        tm = _pick_tile(M, caps[0], 8)
        tn = _pick_tile(Out, caps[1], 128)
        tk = _pick_tile(In, caps[2], 128)
        est = (2 * tm * tk * x_isz + 2 * tn * tk * w_isz
               + 2 * tm * tn * o_isz + tm * tn * 4)
        if est <= budget or max(caps) <= 128:
            break
        caps = tuple(max(c // 2, 128) for c in caps)

    grid = (M // tm, Out // tn, In // tk)
    kernel = functools.partial(_linear_kernel, mxu_dtype=mxu_dtype)
    return pl.pallas_call(
        kernel,
        out_shape=jax.ShapeDtypeStruct((M, Out), out_dtype),
        grid=grid,
        in_specs=[
            pl.BlockSpec((tm, tk), lambda i, j, k: (i, k)),
            pl.BlockSpec((tn, tk), lambda i, j, k: (j, k)),
        ],
        out_specs=pl.BlockSpec((tm, tn), lambda i, j, k: (i, j)),
        scratch_shapes=[pltpu.VMEM((tm, tn), jnp.float32)],
        compiler_params=_mosaic_params(("parallel", "parallel", "arbitrary"), est),
    )(x2d, w)


# ----------------------------------------------------------------------------
# Kernel 3: flash attention over separate head-major q / k / v arrays
# ----------------------------------------------------------------------------
def _flash_attn_kernel(q_ref, k_ref, v_ref, *rest, H, A, scale,
                       mask_mode, mask_heads, compute_dtype):
    if mask_mode is None:
        o_ref, q_sc, m_sc, l_sc, acc_sc = rest
        mask_ref = None
    else:
        mask_ref, o_ref, q_sc, m_sc, l_sc, acc_sc = rest

    ki = pl.program_id(2)

    @pl.when(ki == 0)
    def _init():
        m_sc[...] = jnp.full_like(m_sc, _NEG)       # finite minimum (no -inf NaNs)
        l_sc[...] = jnp.zeros_like(l_sc)
        acc_sc[...] = jnp.zeros_like(acc_sc)
        # q is resident across the kv axis: stage the pre-scaled, per-head
        # contiguous bf16 copy once per q tile (hoists the scale multiply and
        # the per-head lane slicing out of the kv loop).
        for h in range(H):
            qh = q_ref[0, :, h * A:(h + 1) * A].astype(jnp.float32) * scale
            q_sc[h] = qh.astype(compute_dtype)

    for h in range(H):
        q = q_sc[h]                                                # (tq, A)
        k = k_ref[0, :, h * A:(h + 1) * A].astype(compute_dtype)   # (tk, A)
        v = v_ref[0, :, h * A:(h + 1) * A].astype(compute_dtype)   # (tk, A)

        # Contract the head dim of both operands (no in-kernel transpose).
        s = lax.dot_general(q, k, (((1,), (1,)), ((), ())),
                            preferred_element_type=jnp.float32)    # (tq, tk) f32

        if mask_ref is not None:
            hm = h if mask_heads > 1 else 0
            mblk = mask_ref[0, hm]
            if mask_mode == "bool":
                s = jnp.where(mblk != 0, s, _NEG)
            else:
                s = jnp.maximum(s + mblk.astype(jnp.float32), _NEG)

        m_prev = m_sc[:, h:h + 1]                                  # (tq, 1)
        m_new = jnp.maximum(m_prev, s.max(axis=-1, keepdims=True))
        alpha = jnp.exp(m_prev - m_new)
        p = jnp.exp(s - m_new)                                     # (tq, tk) f32
        l_sc[:, h:h + 1] = alpha * l_sc[:, h:h + 1] + p.sum(axis=-1, keepdims=True)
        acc_sc[h] = alpha * acc_sc[h] + jnp.dot(
            p.astype(compute_dtype), v, preferred_element_type=jnp.float32)
        m_sc[:, h:h + 1] = m_new

    @pl.when(ki == pl.num_programs(2) - 1)
    def _done():
        # Direct per-head slab writes into the lane-dense (tq, E) output block
        # (no jnp.concatenate).  Fully-masked rows yield a finite row-mean of V.
        for h in range(H):
            inv = pl.reciprocal(l_sc[:, h:h + 1], approx=True)
            o_ref[0, :, h * A:(h + 1) * A] = (acc_sc[h] * inv).astype(o_ref.dtype)


def flash_attention(q, k, v, H, mask=None, *, compute_dtype=_MXU_DTYPE,
                    out_dtype=None, tile_cap=512, budget=24 << 20):
    """q, k, v: (B, L, E), head-major columns (head h = cols h*A:(h+1)*A)."""
    B, L, E = q.shape
    A = E // H
    scale = float(A) ** -0.5
    out_dtype = q.dtype if out_dtype is None else out_dtype

    mask_mode, mask_heads, mask_op, mask_elem_bytes = None, 0, None, 0
    if mask is not None:
        m = mask
        if m.dtype == jnp.bool_:
            m = m.astype(jnp.int8)          # 1 B/elem; applied with where() in-kernel
            mask_mode = "bool"
        else:
            mask_mode = "add"               # additive mask streamed in its own dtype
        while m.ndim < 4:
            m = m[None]
        Bm, Hm = m.shape[0], m.shape[1]
        assert Bm in (1, B) and Hm in (1, H) and m.shape[2:] == (L, L)
        mask_heads, mask_op = Hm, m
        mask_elem_bytes = Hm * m.dtype.itemsize

    # Tile selection against a per-step VMEM budget (v7x: 64 MiB physical).
    q_isz = q.dtype.itemsize
    o_isz = jnp.dtype(out_dtype).itemsize
    c_isz = jnp.dtype(compute_dtype).itemsize
    a_pad = _round_up(A, 128)
    align = 128 if L % 128 == 0 else 8
    cap = tile_cap
    while True:
        tq = _pick_tile(L, cap, align)
        tk = _pick_tile(L, cap, align)
        tq_pad = _round_up(tq, 8)
        est = (2 * tq * E * q_isz                       # q blocks (double-buffered)
               + 4 * tk * E * q_isz                     # k + v blocks
               + 2 * tq * E * o_isz                     # out blocks
               + 2 * tq * tk * mask_elem_bytes          # mask blocks
               + H * tq_pad * a_pad * (c_isz + 4)       # q_sc + acc scratch
               + 2 * tq_pad * 128 * 4)                  # m, l scratch
        if est <= budget or cap <= 128:
            break
        cap //= 2

    grid = (B, L // tq, L // tk)
    in_specs = [
        pl.BlockSpec((1, tq, E), lambda b, qi, ki: (b, qi, 0)),   # q (resident per q tile)
        pl.BlockSpec((1, tk, E), lambda b, qi, ki: (b, ki, 0)),   # k
        pl.BlockSpec((1, tk, E), lambda b, qi, ki: (b, ki, 0)),   # v
    ]
    operands = [q, k, v]
    if mask_op is not None:
        if mask_op.shape[0] > 1:
            msel = lambda b, qi, ki: (b, 0, qi, ki)
        else:
            msel = lambda b, qi, ki: (0, 0, qi, ki)
        in_specs.append(pl.BlockSpec((1, mask_heads, tq, tk), msel))
        operands.append(mask_op)

    kernel = functools.partial(
        _flash_attn_kernel, H=H, A=A, scale=scale, mask_mode=mask_mode,
        mask_heads=mask_heads, compute_dtype=compute_dtype)

    return pl.pallas_call(
        kernel,
        out_shape=jax.ShapeDtypeStruct((B, L, E), out_dtype),
        grid=grid,
        in_specs=in_specs,
        out_specs=pl.BlockSpec((1, tq, E), lambda b, qi, ki: (b, qi, 0)),
        scratch_shapes=[
            pltpu.VMEM((H, tq, A), compute_dtype),   # pre-scaled q (head slabs)
            pltpu.VMEM((tq, H), jnp.float32),        # running max  (no lane-1 padding)
            pltpu.VMEM((tq, H), jnp.float32),        # running sum
            pltpu.VMEM((H, tq, A), jnp.float32),     # running output accumulator
        ],
        compiler_params=_mosaic_params(("parallel", "parallel", "arbitrary"), est),
    )(*operands)


# ----------------------------------------------------------------------------
# Module forward
# ----------------------------------------------------------------------------
def graph_sdp_attention(embeddings, qkv_w, out_w, H, attn_mask=None, *,
                        mxu_dtype=_MXU_DTYPE, attn_tile_cap=512):
    B, L, E = embeddings.shape
    assert E % H == 0
    A = E // H

    # Reorder the fused PyTorch QKV weight (rows per head: [q_h|k_h|v_h]) into
    # three stacked (E, E) weights with rows ordered [part][head][dim], so the
    # projection emits q/k/v with head-major contiguous columns — the same
    # layout SDPA's output-side permute/reshape produces, so the attention
    # kernel writes the (B, L, E) result directly with no transposes.
    w3 = qkv_w.reshape(H, 3, A, E).transpose(1, 0, 2, 3).reshape(3, E, E)
    w3 = w3.astype(mxu_dtype)          # bf16 weights: native MXU path, half the DMA
    out_w_c = out_w.astype(mxu_dtype)

    # QKV projection: single pass over x, three bf16 (B*L, E) outputs.
    q2, k2, v2 = qkv_projection(embeddings.reshape(B * L, E), w3,
                                out_dtype=mxu_dtype, mxu_dtype=mxu_dtype)
    q3 = q2.reshape(B, L, E)
    k3 = k2.reshape(B, L, E)
    v3 = v2.reshape(B, L, E)

    # Flash attention (bf16 streams, f32 softmax/accumulation).
    attn = flash_attention(q3, k3, v3, H, attn_mask, compute_dtype=mxu_dtype,
                           out_dtype=mxu_dtype, tile_cap=attn_tile_cap)

    # Output projection back to the input dtype.
    out = linear_no_bias(attn.reshape(B * L, E), out_w_c,
                         out_dtype=embeddings.dtype, mxu_dtype=mxu_dtype)
    return out.reshape(B, L, E)


# Pure-JAX f32 reference for verification.
def _reference(embeddings, qkv_w, out_w, H, attn_mask=None):
    B, L, E = embeddings.shape
    A = E // H
    qkv = embeddings @ qkv_w.T
    qkv = qkv.reshape(B, L, H, 3 * A).transpose(0, 2, 1, 3)
    q, k, v = jnp.split(qkv, 3, axis=-1)
    s = jnp.einsum("bhqa,bhka->bhqk", q, k) * (A ** -0.5)
    if attn_mask is not None:
        if attn_mask.dtype == jnp.bool_:
            add = jnp.where(attn_mask, 0.0, -jnp.inf)
        else:
            add = attn_mask
        s = s + jnp.broadcast_to(add, s.shape).astype(s.dtype)
    p = jax.nn.softmax(s, axis=-1)
    o = jnp.einsum("bhqk,bhka->bhqa", p, v)
    o = o.transpose(0, 2, 1, 3).reshape(B, L, E)
    return o @ out_w.T


if __name__ == "__main__":
    def run_case(B, L, E, H, mask_kind, attn_tile_cap=512):
        key = jax.random.PRNGKey(0)
        k1, k2, k3 = jax.random.split(key, 3)
        emb = jax.random.normal(k1, (B, L, E), dtype=jnp.float32)
        qkv_w = jax.random.normal(k2, (3 * E, E), dtype=jnp.float32) * (E ** -0.5)
        out_w = jax.random.normal(k3, (E, E), dtype=jnp.float32) * (E ** -0.5)
        mask = None
        if mask_kind == "bool":
            mask = jnp.tril(jnp.ones((L, L), dtype=jnp.bool_))
        elif mask_kind == "float":
            mask = jnp.where(jnp.tril(jnp.ones((L, L), dtype=jnp.bool_)),
                             0.0, -1e9).astype(jnp.float32)
        out = graph_sdp_attention(emb, qkv_w, out_w, H, mask,
                                  attn_tile_cap=attn_tile_cap)
        out = jax.block_until_ready(out)
        ref = _reference(emb, qkv_w, out_w, H, mask)
        assert out.shape == (B, L, E)
        err = float(jnp.max(jnp.abs(out - ref)))
        assert jnp.allclose(out, ref, atol=2e-2, rtol=2e-2), (
            f"mismatch B={B} L={L} E={E} H={H} mask={mask_kind}: max_abs_err={err}")

    # Small shapes consistent with the module (B=2, L=8, E=32, H=4 -> A=8).
    run_case(2, 8, 32, 4, None)
    run_case(2, 8, 32, 4, "bool")
    run_case(2, 8, 32, 4, "float")
    # Multi-tile path: forces tq=tk=128 so the online-softmax accumulation,
    # masked-tile guard and q-staging across several kv tiles are exercised.
    run_case(2, 256, 128, 4, "bool", attn_tile_cap=128)

    print("KERNEL_OK")
</pallas_src>

<mosaic_0001>
module attributes {stable_mosaic.version = 11 : i64} {
  func.func @_qkv_proj_kernel(%arg0: i32, %arg1: i32, %arg2: i32, %arg3: memref<16x32xf32, #tpu.memory_space<vmem>>, %arg4: memref<3x32x32xbf16, #tpu.memory_space<vmem>>, %arg5: memref<16x32xbf16, #tpu.memory_space<vmem>>, %arg6: memref<16x32xbf16, #tpu.memory_space<vmem>>, %arg7: memref<16x32xbf16, #tpu.memory_space<vmem>>, %arg8: memref<3x16x32xf32, #tpu.memory_space<vmem>>) attributes {dimension_semantics = [#tpu.dimension_semantics<parallel>, #tpu.dimension_semantics<parallel>, #tpu.dimension_semantics<arbitrary>], iteration_bounds = array<i64: 1, 1, 1>, scalar_prefetch = 0 : i64, scratch_operands = 1 : i64, tpu.core_type = #tpu.core_type<tc>, window_params = [{transform_indices = @transform_0, window_bounds = array<i64: 16, 32>}, {transform_indices = @transform_1, window_bounds = array<i64: 3, 32, 32>}, {transform_indices = @transform_2, window_bounds = array<i64: 16, 32>}, {transform_indices = @transform_3, window_bounds = array<i64: 16, 32>}, {transform_indices = @transform_4, window_bounds = array<i64: 16, 32>}]} {
    %c0_i32 = arith.constant 0 : i32
    %0 = arith.cmpi eq, %arg2, %c0_i32 : i32
    %1 = arith.extui %0 : i1 to i32
    %c0_i32_0 = arith.constant 0 : i32
    %2 = arith.cmpi ne, %1, %c0_i32_0 : i32
    scf.if %2 {
      %cst_31 = arith.constant 0.000000e+00 : f32
      %35 = vector.broadcast %cst_31 : f32 to vector<3x16x32xf32>
      %c0_32 = arith.constant 0 : index
      %c0_33 = arith.constant 0 : index
      %c0_34 = arith.constant 0 : index
      %36 = vector.load %arg8[%c0_32, %c0_33, %c0_34] : memref<3x16x32xf32, #tpu.memory_space<vmem>>, vector<3x16x32xf32>
      tpu.vector_store %arg8[%c0_32, %c0_33, %c0_34], %35 {strides = array<i32>} : memref<3x16x32xf32, #tpu.memory_space<vmem>>, vector<3x16x32xf32>,
    } else {
    }
    %c0 = arith.constant 0 : index
    %c0_1 = arith.constant 0 : index
    %3 = vector.load %arg3[%c0, %c0_1] : memref<16x32xf32, #tpu.memory_space<vmem>>, vector<16x32xf32>
    %4 = arith.truncf %3 : vector<16x32xf32> to vector<16x32xbf16>
    %c0_2 = arith.constant 0 : index
    %c0_3 = arith.constant 0 : index
    %c0_4 = arith.constant 0 : index
    %5 = vector.load %arg4[%c0_2, %c0_3, %c0_4] : memref<3x32x32xbf16, #tpu.memory_space<vmem>>, vector<1x32x32xbf16>
    %6 = vector.shape_cast %5 : vector<1x32x32xbf16> to vector<32x32xbf16>
    %c0_5 = arith.constant 0 : index
    %c0_6 = arith.constant 0 : index
    %c0_7 = arith.constant 0 : index
    %7 = vector.load %arg8[%c0_5, %c0_6, %c0_7] : memref<3x16x32xf32, #tpu.memory_space<vmem>>, vector<1x16x32xf32>
    %8 = vector.shape_cast %7 : vector<1x16x32xf32> to vector<16x32xf32>
    %cst = arith.constant dense<0.000000e+00> : vector<16x32xf32>
    %9 = tpu.matmul %4, %6, %cst {dimension_numbers = #tpu.dot_dimension_numbers<[1], [1], [0], [0], [0, 0, 1, 0], [], []>} : vector<16x32xbf16>, vector<32x32xbf16>, vector<16x32xf32> -> vector<16x32xf32>
    %10 = arith.addf %8, %9 : vector<16x32xf32>
    %c0_8 = arith.constant 0 : index
    %c0_9 = arith.constant 0 : index
    %c0_10 = arith.constant 0 : index
    %11 = vector.load %arg8[%c0_8, %c0_9, %c0_10] : memref<3x16x32xf32, #tpu.memory_space<vmem>>, vector<1x16x32xf32>
    %12 = vector.shape_cast %11 : vector<1x16x32xf32> to vector<16x32xf32>
    %13 = vector.shape_cast %10 : vector<16x32xf32> to vector<1x16x32xf32>
    tpu.vector_store %arg8[%c0_8, %c0_9, %c0_10], %13 {strides = array<i32>} : memref<3x16x32xf32, #tpu.memory_space<vmem>>, vector<1x16x32xf32>,
    %c1 = arith.constant 1 : index
    %c0_11 = arith.constant 0 : index
    %c0_12 = arith.constant 0 : index
    %14 = vector.load %arg4[%c1, %c0_11, %c0_12] : memref<3x32x32xbf16, #tpu.memory_space<vmem>>, vector<1x32x32xbf16>
    %15 = vector.shape_cast %14 : vector<1x32x32xbf16> to vector<32x32xbf16>
    %c1_13 = arith.constant 1 : index
    %c0_14 = arith.constant 0 : index
    %c0_15 = arith.constant 0 : index
    %16 = vector.load %arg8[%c1_13, %c0_14, %c0_15] : memref<3x16x32xf32, #tpu.memory_space<vmem>>, vector<1x16x32xf32>
    %17 = vector.shape_cast %16 : vector<1x16x32xf32> to vector<16x32xf32>
    %cst_16 = arith.constant dense<0.000000e+00> : vector<16x32xf32>
    %18 = tpu.matmul %4, %15, %cst_16 {dimension_numbers = #tpu.dot_dimension_numbers<[1], [1], [0], [0], [0, 0, 1, 0], [], []>} : vector<16x32xbf16>, vector<32x32xbf16>, vector<16x32xf32> -> vector<16x32xf32>
    %19 = arith.addf %17, %18 : vector<16x32xf32>
    %c1_17 = arith.constant 1 : index
    %c0_18 = arith.constant 0 : index
    %c0_19 = arith.constant 0 : index
    %20 = vector.load %arg8[%c1_17, %c0_18, %c0_19] : memref<3x16x32xf32, #tpu.memory_space<vmem>>, vector<1x16x32xf32>
    %21 = vector.shape_cast %20 : vector<1x16x32xf32> to vector<16x32xf32>
    %22 = vector.shape_cast %19 : vector<16x32xf32> to vector<1x16x32xf32>
    tpu.vector_store %arg8[%c1_17, %c0_18, %c0_19], %22 {strides = array<i32>} : memref<3x16x32xf32, #tpu.memory_space<vmem>>, vector<1x16x32xf32>,
    %c2 = arith.constant 2 : index
    %c0_20 = arith.constant 0 : index
    %c0_21 = arith.constant 0 : index
    %23 = vector.load %arg4[%c2, %c0_20, %c0_21] : memref<3x32x32xbf16, #tpu.memory_space<vmem>>, vector<1x32x32xbf16>
    %24 = vector.shape_cast %23 : vector<1x32x32xbf16> to vector<32x32xbf16>
    %c2_22 = arith.constant 2 : index
    %c0_23 = arith.constant 0 : index
    %c0_24 = arith.constant 0 : index
    %25 = vector.load %arg8[%c2_22, %c0_23, %c0_24] : memref<3x16x32xf32, #tpu.memory_space<vmem>>, vector<1x16x32xf32>
    %26 = vector.shape_cast %25 : vector<1x16x32xf32> to vector<16x32xf32>
    %cst_25 = arith.constant dense<0.000000e+00> : vector<16x32xf32>
    %27 = tpu.matmul %4, %24, %cst_25 {dimension_numbers = #tpu.dot_dimension_numbers<[1], [1], [0], [0], [0, 0, 1, 0], [], []>} : vector<16x32xbf16>, vector<32x32xbf16>, vector<16x32xf32> -> vector<16x32xf32>
    %28 = arith.addf %26, %27 : vector<16x32xf32>
    %c2_26 = arith.constant 2 : index
    %c0_27 = arith.constant 0 : index
    %c0_28 = arith.constant 0 : index
    %29 = vector.load %arg8[%c2_26, %c0_27, %c0_28] : memref<3x16x32xf32, #tpu.memory_space<vmem>>, vector<1x16x32xf32>
    %30 = vector.shape_cast %29 : vector<1x16x32xf32> to vector<16x32xf32>
    %31 = vector.shape_cast %28 : vector<16x32xf32> to vector<1x16x32xf32>
    tpu.vector_store %arg8[%c2_26, %c0_27, %c0_28], %31 {strides = array<i32>} : memref<3x16x32xf32, #tpu.memory_space<vmem>>, vector<1x16x32xf32>,
    %c0_i32_29 = arith.constant 0 : i32
    %32 = arith.cmpi eq, %arg2, %c0_i32_29 : i32
    %33 = arith.extui %32 : i1 to i32
    %c0_i32_30 = arith.constant 0 : i32
    %34 = arith.cmpi ne, %33, %c0_i32_30 : i32
    scf.if %34 {
      %c0_31 = arith.constant 0 : index
      %c0_32 = arith.constant 0 : index
      %c0_33 = arith.constant 0 : index
      %35 = vector.load %arg8[%c0_31, %c0_32, %c0_33] : memref<3x16x32xf32, #tpu.memory_space<vmem>>, vector<1x16x32xf32>
      %36 = vector.shape_cast %35 : vector<1x16x32xf32> to vector<16x32xf32>
      %37 = arith.truncf %36 : vector<16x32xf32> to vector<16x32xbf16>
      %c0_34 = arith.constant 0 : index
      %c0_35 = arith.constant 0 : index
      %38 = vector.load %arg5[%c0_34, %c0_35] : memref<16x32xbf16, #tpu.memory_space<vmem>>, vector<16x32xbf16>
      tpu.vector_store %arg5[%c0_34, %c0_35], %37 {strides = array<i32>} : memref<16x32xbf16, #tpu.memory_space<vmem>>, vector<16x32xbf16>,
      %c1_36 = arith.constant 1 : index
      %c0_37 = arith.constant 0 : index
      %c0_38 = arith.constant 0 : index
      %39 = vector.load %arg8[%c1_36, %c0_37, %c0_38] : memref<3x16x32xf32, #tpu.memory_space<vmem>>, vector<1x16x32xf32>
      %40 = vector.shape_cast %39 : vector<1x16x32xf32> to vector<16x32xf32>
      %41 = arith.truncf %40 : vector<16x32xf32> to vector<16x32xbf16>
      %c0_39 = arith.constant 0 : index
      %c0_40 = arith.constant 0 : index
      %42 = vector.load %arg6[%c0_39, %c0_40] : memref<16x32xbf16, #tpu.memory_space<vmem>>, vector<16x32xbf16>
      tpu.vector_store %arg6[%c0_39, %c0_40], %41 {strides = array<i32>} : memref<16x32xbf16, #tpu.memory_space<vmem>>, vector<16x32xbf16>,
      %c2_41 = arith.constant 2 : index
      %c0_42 = arith.constant 0 : index
      %c0_43 = arith.constant 0 : index
      %43 = vector.load %arg8[%c2_41, %c0_42, %c0_43] : memref<3x16x32xf32, #tpu.memory_space<vmem>>, vector<1x16x32xf32>
      %44 = vector.shape_cast %43 : vector<1x16x32xf32> to vector<16x32xf32>
      %45 = arith.truncf %44 : vector<16x32xf32> to vector<16x32xbf16>
      %c0_44 = arith.constant 0 : index
      %c0_45 = arith.constant 0 : index
      %46 = vector.load %arg7[%c0_44, %c0_45] : memref<16x32xbf16, #tpu.memory_space<vmem>>, vector<16x32xbf16>
      tpu.vector_store %arg7[%c0_44, %c0_45], %45 {strides = array<i32>} : memref<16x32xbf16, #tpu.memory_space<vmem>>, vector<16x32xbf16>,
    } else {
    }
    return
  }
  func.func @transform_0(%arg0: i32, %arg1: i32, %arg2: i32) -> (i32, i32) {
    %c0_i32 = arith.constant 0 : i32
    return %arg0, %arg2 : i32, i32
  }
  func.func @transform_1(%arg0: i32, %arg1: i32, %arg2: i32) -> (i32, i32, i32) {
    %c0_i32 = arith.constant 0 : i32
    %c0_i32_0 = arith.constant 0 : i32
    return %c0_i32, %arg1, %arg2 : i32, i32, i32
  }
  func.func @transform_2(%arg0: i32, %arg1: i32, %arg2: i32) -> (i32, i32) {
    %c0_i32 = arith.constant 0 : i32
    return %arg0, %arg1 : i32, i32
  }
  func.func @transform_3(%arg0: i32, %arg1: i32, %arg2: i32) -> (i32, i32) {
    %c0_i32 = arith.constant 0 : i32
    return %arg0, %arg1 : i32, i32
  }
  func.func @transform_4(%arg0: i32, %arg1: i32, %arg2: i32) -> (i32, i32) {
    %c0_i32 = arith.constant 0 : i32
    return %arg0, %arg1 : i32, i32
  }
}

</mosaic_0001>

<bundles_post_ra>
// kernel: tpu_custom_call.1
= control target key start
LH: loop header
LB: loop body
LE: loop exit
PB: predicated region body
PF: predicated region fallthrough
CT: control target
= control target key end

     0   :  { %10 = vsyncpa [#allocation4], 0  ;;  %s528_s0 = inlined_call_operand.hbm [shape: f32[16,32], index: 0, kind: input, shape index: {}]   ;;  %s529_s1 = inlined_call_operand.hbm [shape: bf16[3,32,32], index: 1, kind: input, shape index: {}]   ;;  %s530_s2 = inlined_call_operand.hbm [shape: bf16[16,32], index: 2, kind: output, shape index: {0}]   ;;  %s531_s3 = inlined_call_operand.hbm [shape: bf16[16,32], index: 3, kind: output, shape index: {1}]   ;;  %s532_s4 = inlined_call_operand.hbm [shape: bf16[16,32], index: 4, kind: output, shape index: {2}]  }
   0x1   :  { %11 = vsyncpa [#allocation7], 0 }
   0x2   :  { %12 = vsyncpa [#allocation5], 0 }
   0x3   :  { %13 = vsyncpa [#allocation10], 0  ;;  %s18_s17 = sshll.u32 %s528_s0, 4  ;;  %s439_s18 = smov [#allocation3]   ;;  %s19_s17 = int_to_ptr.hbm [resolvable:$true] %s18_s17 }
   0x4   :  { %s20_s19 = sshll.u32 %s439_s18, 4  ;;  %s31_s22 = sshll.u32 %s529_s1, 4  ;;  %s21_s19 = int_to_ptr.vmem [resolvable:$true] %s20_s19  ;;  %s32_s22 = int_to_ptr.hbm [resolvable:$true] %s31_s22 }
   0x5   :  { %s440_s23 = smov 128   ;;  %s441_s24 = smov 8  }
   0x6   :  { %26 = dma.hbm_to_vmem [thread:$0]  %s19_s17, 256, %s21_s19, [#allocation4], %s440_s23, %s440_s23, %s441_s24  }
   0x7   :  { %s442_s25 = smov [#allocation6]   ;;  %s443_s27 = smov 64  }
   0x8   :  { %s33_s26 = sshll.u32 %s442_s25, 4  ;;  %s444_s28 = smov 4   ;;  %s34_s26 = int_to_ptr.vmem [resolvable:$true] %s33_s26 }
   0x9   :  { %39 = dma.hbm_to_vmem [thread:$0]  %s32_s22, 768, %s34_s26, [#allocation7], %s443_s27, %s443_s27, %s444_s28  }
   0xa   :  { %431 = dma.done.wait [#allocation4], 256  }
   0xb   :  { %432 = vsyncadd [#allocation4], 4294967040 }
   0xc   :  { %433 = dma.done.wait [#allocation7], 768  }
   0xd   :  { %434 = vsyncadd [#allocation7], 4294966528  ;;  %vm53_vm0 = vcmask 261120   ;;  %v445_v0 = vmov 0.0   ;;  %v296_v1 = vld [vmem:[#allocation6 + $0x8] sm:$0xff]  ;;  %v298_v2 = vld [vmem:[#allocation6 + $0x18] sm:$0xff] }
   0xe   :  { %54 = vst.msk [vmem:[#allocation2] sm:$0xff] %vm53_vm0, %v445_v0  ;;  %v300_v3 = vld [vmem:[#allocation6 + $0x28] sm:$0xff]  ;;  %v87_v4 = vsel %vm53_vm0, %v296_v1, 0  ;;  %v129_v5 = vsel %vm53_vm0, %v298_v2, 0  ;;  %v295_v7 = vld [vmem:[#allocation6] sm:$0xff]  ;;  %v297_v8 = vld [vmem:[#allocation6 + $0x10] sm:$0xff] }
   0xf   :  { %55 = vst.msk [vmem:[#allocation2 + $0x8] sm:$0xff] %vm53_vm0, %v445_v0  ;;  %v171_v6 = vsel %vm53_vm0, %v300_v3, 0  ;;  %95 = vmatpush.bf16.xpose.msra.mxu0 %v87_v4  ;;  %137 = vmatpush.bf16.xpose.msra.mxu1 %v129_v5  ;;  %v299_v9 = vld [vmem:[#allocation6 + $0x20] sm:$0xff]  ;;  %v84_v10 = vsel %vm53_vm0, %v295_v7, 0  ;;  %v126_v11 = vsel %vm53_vm0, %v297_v8, 0  ;;  %v60_v13 = vld [vmem:[#allocation3] sm:$0xff] }
  0x10   :  { %56 = vst.msk [vmem:[#allocation2 + $0x10] sm:$0xff] %vm53_vm0, %v445_v0  ;;  %179 = vmatpush.bf16.xpose.msra.mxu2 %v171_v6  ;;  %v168_v12 = vsel %vm53_vm0, %v299_v9, 0  ;;  %v61_v14 = vld [vmem:[#allocation3 + $0x8] sm:$0xff]  ;;  %vm198_vm1 = vcmask 257024   ;;  %s446_s0 = smov [#allocation8]   ;;  %s219_s5 = sshll.u32 %s530_s2, 4  ;;  %s220_s5 = int_to_ptr.hbm [resolvable:$true] %s219_s5 }
  0x11   :  { %57 = vst.msk [vmem:[#allocation2 + $0x18] sm:$0xff] %vm53_vm0, %v445_v0  ;;  %v62_v15 = vpack.c.bf16 %v61_v14, %v60_v13  ;;  %s217_s1 = sshll.u32 %s446_s0, 4  ;;  %s447_s6 = smov [#allocation9]   ;;  %s218_s1 = int_to_ptr.vmem [resolvable:$true] %s217_s1 }
  0x12   :  { %58 = vst.msk [vmem:[#allocation2 + $0x20] sm:$0xff] %vm53_vm0, %v445_v0  ;;  %s230_s7 = sshll.u32 %s447_s6, 4  ;;  %s232_s10 = sshll.u32 %s531_s3, 4  ;;  %s231_s7 = int_to_ptr.vmem [resolvable:$true] %s230_s7  ;;  %s233_s10 = int_to_ptr.hbm [resolvable:$true] %s232_s10 }
  0x13   :  { %59 = vst.msk [vmem:[#allocation2 + $0x28] sm:$0xff] %vm53_vm0, %v445_v0  ;;  %s448_s2 = smov [#allocation11]   ;;  %s245_s13 = sshll.u32 %s532_s4, 4  ;;  %s246_s13 = int_to_ptr.hbm [resolvable:$true] %s245_s13 }
  0x14   :  { %s243_s11 = sshll.u32 %s448_s2, 4  ;;  %s244_s11 = int_to_ptr.vmem [resolvable:$true] %s243_s11 }
  0x15   :  { %v67_v16 = vld [vmem:[#allocation2] sm:$0xff] }
  0x16   :  { %v68_v23 = vld [vmem:[#allocation2 + $0x8] sm:$0xff] }
  0x17   :  { %96 = vmatpush.bf16.xpose.msra.mxu0 %v84_v10  ;;  %138 = vmatpush.bf16.xpose.msra.mxu1 %v126_v11  ;;  %v113_v17 = vld [vmem:[#allocation2 + $0x10] sm:$0xff] }
  0x18   :  { %180 = vmatpush.bf16.xpose.msra.mxu2 %v168_v12  ;;  %v114_v24 = vld [vmem:[#allocation2 + $0x18] sm:$0xff] }
  0x19   :  { %v155_v22 = vld [vmem:[#allocation2 + $0x20] sm:$0xff] }
  0x1a   :  { %v156_v35 = vld [vmem:[#allocation2 + $0x28] sm:$0xff] }
  0x1e   :  { %276 = vmatmul.msk.bf16.vlgmr.msra.gmra.mxu0 %vm53_vm0, %v62_v15  ;;  %285 = vmatmul.msk.bf16.vlgmr.msra.gmra.mxu1 %vm53_vm0, %v62_v15 }
  0x1f   :  { %294 = vmatmul.msk.bf16.vlgmr.msra.gmra.mxu2 %vm53_vm0, %v62_v15 }
  0x9b   :  { %v98_v18 = vpop.f32.mrf.mxu0  ;;  %v140_v19 = vpop.f32.mrf.mxu1 }
  0x9c   :  { %v103_v20 = vadd.f32 %v98_v18, %v67_v16  ;;  %v145_v21 = vadd.f32 %v140_v19, %v113_v17 }
  0x9e   :  { %105 = vst.msk [vmem:[#allocation2] sm:$0xff] %vm53_vm0, %v103_v20 }
  0x9f   :  { %147 = vst.msk [vmem:[#allocation2 + $0x10] sm:$0xff] %vm53_vm0, %v145_v21 }
  0xa2   :  { %v182_v25 = vpop.f32.mrf.mxu2 }
  0xa3   :  { %v187_v26 = vadd.f32 %v182_v25, %v155_v22  ;;  %v100_v27 = vpop.f32.mrf.mxu0  ;;  %v142_v28 = vpop.f32.mrf.mxu1 }
  0xa4   :  { %v104_v29 = vadd.f32 %v100_v27, %v68_v23  ;;  %v146_v30 = vadd.f32 %v142_v28, %v114_v24 }
  0xa5   :  { %189 = vst.msk [vmem:[#allocation2 + $0x20] sm:$0xff] %vm53_vm0, %v187_v26  ;;  %v194_v31 = vld [vmem:[#allocation2] sm:$0xff] }
  0xa6   :  { %106 = vst.msk [vmem:[#allocation2 + $0x8] sm:$0xff] %vm53_vm0, %v104_v29  ;;  %v201_v32 = vld [vmem:[#allocation2 + $0x10] sm:$0xff]  ;;  %v196_v33 = vpack.c.bf16 %v194_v31, %v194_v31 }
  0xa7   :  { %148 = vst.msk [vmem:[#allocation2 + $0x18] sm:$0xff] %vm53_vm0, %v146_v30  ;;  %v203_v34 = vpack.c.bf16 %v201_v32, %v201_v32 }
  0xa8   :  { %199 = vst.msk [vmem:[#allocation8] sm:$0xf] %vm198_vm1, %v196_v33 }
  0xa9   :  { %205 = vst.msk [vmem:[#allocation9] sm:$0xf] %vm198_vm1, %v203_v34 }
  0xaa   :  { %v184_v36 = vpop.f32.mrf.mxu2 }
  0xab   :  { %v188_v37 = vadd.f32 %v184_v36, %v156_v35 }
  0xac   :  { %v207_v38 = vld [vmem:[#allocation2 + $0x20] sm:$0xff] }
  0xad   :  { %190 = vst.msk [vmem:[#allocation2 + $0x28] sm:$0xff] %vm53_vm0, %v188_v37  ;;  %v195_v39 = vld [vmem:[#allocation2 + $0x8] sm:$0xff]  ;;  %v209_v40 = vpack.c.bf16 %v207_v38, %v207_v38 }
  0xae   :  { %v202_v41 = vld [vmem:[#allocation2 + $0x18] sm:$0xff]  ;;  %v197_v42 = vpack.c.bf16 %v195_v39, %v195_v39 }
  0xaf   :  { %v204_v43 = vpack.c.bf16 %v202_v41, %v202_v41  ;;  %211 = vst.msk [vmem:[#allocation11] sm:$0xf] %vm198_vm1, %v209_v40 }
  0xb0   :  { %200 = vst.msk [vmem:[#allocation8 + $0x4] sm:$0xf] %vm198_vm1, %v197_v42 }
  0xb1   :  { %206 = vst.msk [vmem:[#allocation9 + $0x4] sm:$0xf] %vm198_vm1, %v204_v43  ;;  %225 = dma.vmem_to_hbm [thread:$0]  %s218_s1, 128, %s220_s5, [#allocation5], %s443_s27, %s443_s27, %s444_s28  }
  0xb2   :  { %238 = dma.vmem_to_hbm [thread:$0]  %s231_s7, 128, %s233_s10, [#allocation10], %s443_s27, %s443_s27, %s444_s28  }
  0xb4   :  { %v208_v44 = vld [vmem:[#allocation2 + $0x28] sm:$0xff] }
  0xb5   :  { %v210_v45 = vpack.c.bf16 %v208_v44, %v208_v44 }
  0xb7   :  { %212 = vst.msk [vmem:[#allocation11 + $0x4] sm:$0xf] %vm198_vm1, %v210_v45 }
  0xb8   :  { %251 = dma.vmem_to_hbm [thread:$0]  %s244_s11, 128, %s246_s13, [#allocation10], %s443_s27, %s443_s27, %s444_s28  }
  0xb9   :  { %435 = dma.done.wait [#allocation5], 128  }
  0xba   :  { %436 = vsyncadd [#allocation5], 4294967168 }
  0xbb   :  { %437 = dma.done.wait [#allocation10], 256  }
  0xbc   :  { %438 = vsyncadd [#allocation10], 4294967040 }
  0xbd   :  { %264 = vsyncpa [#allocation4], 1 }
  0xbe   :  { %265 = vsyncpa [#allocation7], 1 }
  0xbf   :  { %266 = vsyncpa [#allocation5], 1 }
  0xc0   :  { %267 = vsyncpa [#allocation10], 1 }

</bundles_post_ra>
